<compile_context>
chip_gen: v5e
topology: v5e:2x2
jax: 0.10.0
libtpu: 0.0.40
codegen_flags: <defaults>
</compile_context>

<pallas_src>
import functools

import jax
import jax.numpy as jnp
from jax.experimental import pallas as pl
from jax.experimental.pallas import tpu as pltpu

EPS = 1e-5                      # nn.BatchNorm1d default eps
_MAX_BATCH_UNROLL = 8           # static unroll bound for the per-batch matmul loop
_TARGET_STEP_BYTES = 2 << 20    # aim for ~2 MiB of HBM traffic per grid step


def _vmem_budget_bytes():
    """Per-generation scoped-VMEM budget with headroom for Mosaic scratch."""
    try:
        cap = int(pltpu.get_tpu_info().vmem_capacity_bytes)
    except Exception:
        cap = 64 * 1024 * 1024  # conservative default (v7x physical VMEM)
    # ~60% of physical, capped: ~38 MiB on v7x (64 MiB), ~77 MiB on v5e/v6e (128 MiB).
    return max(16 * 1024 * 1024, min(int(cap * 0.6), 96 * 1024 * 1024))


_VMEM_BUDGET = _vmem_budget_bytes()


def _conv_row(w_ref, xb, taps, tap_off, l_out):
    """K-tap conv for one batch row: sum_k W_k @ xb[:, k*d : k*d + L_out] (MXU)."""
    acc = jnp.dot(w_ref[0], xb[:, 0:l_out], preferred_element_type=jnp.float32)
    for k in range(1, taps):
        s = k * tap_off
        acc = acc + jnp.dot(w_ref[k], xb[:, s:s + l_out],
                            preferred_element_type=jnp.float32)
    return acc                                               # (C_out, L_out) f32


def _fused_kernel(w_ref, x_ref, g_ref, be_ref, o_ref, sum_acc, sq_acc, *,
                  taps, tap_off, tb, l_out, inv_n):
    """Conv + BN-stats + in-place BN affine/ReLU on a VMEM-resident NCL output."""
    step = pl.program_id(0)

    @pl.when(step == 0)
    def _():
        sum_acc[...] = jnp.zeros_like(sum_acc)
        sq_acc[...] = jnp.zeros_like(sq_acc)

    for bi in range(tb):                                     # static unroll (tb small)
        y = _conv_row(w_ref, x_ref[bi], taps, tap_off, l_out)
        o_ref[step * tb + bi] = y                            # unnormalized y, NCL layout
        sum_acc[...] += y                                    # elementwise VPU adds;
        sq_acc[...] += y * y                                 # lane-reduce in epilogue

    @pl.when(step == pl.num_programs(0) - 1)
    def _():
        # Padded batch rows are exact zeros (no conv bias) -> contribute 0 to both
        # sums, so divide by the real B*L_out.  Single-pass E[x^2]-E[x]^2 in f32
        # with a clamp; TODO(synk): shifted/Welford accumulation if |mean| >> std.
        inv = jnp.float32(inv_n)
        mean = jnp.sum(sum_acc[...], axis=1, keepdims=True) * inv       # (C_out, 1)
        ex2 = jnp.sum(sq_acc[...], axis=1, keepdims=True) * inv
        var = jnp.maximum(ex2 - mean * mean, 0.0)
        scale = g_ref[...] * jax.lax.rsqrt(var + EPS)                   # (C_out, 1)
        shift = be_ref[...] - mean * scale
        # BN affine + ReLU on the VMEM-resident output: y hits HBM exactly once.
        o_ref[...] = jnp.maximum(
            o_ref[...] * scale[None, :, :] + shift[None, :, :], 0.0)


def _streamed_kernel(w_ref, x_ref, g_ref, be_ref, y_ref, scale_ref, shift_ref,
                     sum_acc, sq_acc, *, taps, tap_off, tb, l_out, inv_n):
    """Fallback: stream unnormalized y to HBM, emit BN scale/shift at the end."""
    step = pl.program_id(0)

    @pl.when(step == 0)
    def _():
        sum_acc[...] = jnp.zeros_like(sum_acc)
        sq_acc[...] = jnp.zeros_like(sq_acc)
        scale_ref[...] = jnp.zeros_like(scale_ref)   # safeguard for revisited blocks
        shift_ref[...] = jnp.zeros_like(shift_ref)

    for bi in range(tb):
        y = _conv_row(w_ref, x_ref[bi], taps, tap_off, l_out)
        y_ref[bi] = y
        sum_acc[...] += y
        sq_acc[...] += y * y

    @pl.when(step == pl.num_programs(0) - 1)
    def _():
        inv = jnp.float32(inv_n)
        mean = jnp.sum(sum_acc[...], axis=1, keepdims=True) * inv
        ex2 = jnp.sum(sq_acc[...], axis=1, keepdims=True) * inv
        var = jnp.maximum(ex2 - mean * mean, 0.0)
        scale = g_ref[...] * jax.lax.rsqrt(var + EPS)
        scale_ref[...] = scale
        shift_ref[...] = be_ref[...] - mean * scale


@functools.partial(jax.jit, static_argnames=("stride", "padding", "dilation"))
def conv_bn_relu(x, w, b, gamma, beta, *, stride=1, padding=0, dilation=1):
    """x: (B, C_in, L); w: (C_out, C_in, K); b/gamma/beta: (C_out,) -> (B, C_out, L_out)."""
    del b  # conv bias cancels exactly under train-mode BatchNorm (mean absorbs it)
    # TODO(synk): groups > 1 not implemented (groups=1, the module default).
    B, C_in, L = x.shape
    C_out, _, K = w.shape
    L_out = (L + 2 * padding - dilation * (K - 1) - 1) // stride + 1

    x = x.astype(jnp.float32)
    w = w.astype(jnp.float32)

    if stride == 1:
        # im2col folded into the kernel: K shifted matmuls over the padded row.
        x_k = jnp.pad(x, ((0, 0), (0, 0), (padding, padding)))
        C_e, L_e, taps, tap_off = C_in, L + 2 * padding, K, dilation
        w3 = jnp.transpose(w, (2, 0, 1))                        # (K, C_out, C_in)
    else:
        # TODO(synk): strided conv still uses an XLA-materialized im2col
        # (K/stride read amplification); fold via strided in-kernel loads later.
        x_pad = jnp.pad(x, ((0, 0), (0, 0), (padding, padding)))
        cols = [x_pad[:, :, k * dilation:k * dilation + (L_out - 1) * stride + 1:stride]
                for k in range(K)]
        x_k = jnp.stack(cols, axis=2).reshape(B, C_in * K, L_out)
        C_e, L_e, taps, tap_off = C_in * K, L_out, 1, 0
        w3 = w.reshape(1, C_out, C_in * K)

    g_col = gamma.reshape(C_out, 1).astype(jnp.float32)
    be_col = beta.reshape(C_out, 1).astype(jnp.float32)

    # --- batch-tile sizing from the per-step traffic target / VMEM budget ---
    row_bytes = 4 * (C_e * L_e + C_out * L_out)
    tb = int(max(1, min(B, _MAX_BATCH_UNROLL,
                        _TARGET_STEP_BYTES // max(row_bytes, 1))))
    n_steps = -(-B // tb)
    B_pad = n_steps * tb
    if B_pad != B:
        x_k = jnp.pad(x_k, ((0, B_pad - B), (0, 0), (0, 0)))
    inv_n = 1.0 / float(B * L_out)       # padded rows are zero -> divide by real count

    out_bytes = 4 * B_pad * C_out * L_out
    x_tile_bytes = 4 * tb * C_e * L_e
    fixed_bytes = 4 * taps * C_out * C_e + 8 * C_out * L_out + (64 << 10)
    # Count the resident output twice (pipeline buffering) to stay conservative on
    # v7x's 64 MiB VMEM; v5e/v6e get a proportionally larger budget.
    use_fused = (2 * out_bytes + 2 * x_tile_bytes + fixed_bytes
                 <= int(0.8 * _VMEM_BUDGET))

    in_specs = [
        pl.BlockSpec((taps, C_out, C_e), lambda g: (0, 0, 0)),   # weights (resident)
        pl.BlockSpec((tb, C_e, L_e), lambda g: (g, 0, 0)),       # x batch tile (NCL)
        pl.BlockSpec((C_out, 1), lambda g: (0, 0)),              # gamma
        pl.BlockSpec((C_out, 1), lambda g: (0, 0)),              # beta
    ]
    scratch = [pltpu.VMEM((C_out, L_out), jnp.float32),          # elementwise sum acc
               pltpu.VMEM((C_out, L_out), jnp.float32)]          # elementwise sum-sq acc
    cost = pl.CostEstimate(
        flops=2 * B_pad * L_out * C_out * C_e * taps + 8 * B_pad * C_out * L_out,
        transcendentals=C_out,
        bytes_accessed=4 * (B_pad * C_e * L_e + B_pad * C_out * L_out
                            + taps * C_out * C_e + 4 * C_out),
    )
    cparams = pltpu.CompilerParams(
        dimension_semantics=("arbitrary",),   # sequential: cross-step BN stats
        vmem_limit_bytes=_VMEM_BUDGET,
    )

    if use_fused:
        out_full = pl.pallas_call(
            functools.partial(_fused_kernel, taps=taps, tap_off=tap_off,
                              tb=tb, l_out=L_out, inv_n=inv_n),
            out_shape=jax.ShapeDtypeStruct((B_pad, C_out, L_out), jnp.float32),
            grid_spec=pltpu.PrefetchScalarGridSpec(
                num_scalar_prefetch=0,
                grid=(n_steps,),
                in_specs=in_specs,
                out_specs=pl.BlockSpec((B_pad, C_out, L_out),
                                       lambda g: (0, 0, 0)),     # VMEM-resident output
                scratch_shapes=scratch,
            ),
            compiler_params=cparams,
            cost_estimate=cost,
        )(w3, x_k, g_col, be_col)
        return out_full if B_pad == B else out_full[:B]

    # Streaming fallback: unnormalized y to HBM + scale/shift; BN affine + ReLU is
    # one XLA-fused elementwise sweep (no transpose, no Pallas pass 2).
    y, scale, shift = pl.pallas_call(
        functools.partial(_streamed_kernel, taps=taps, tap_off=tap_off,
                          tb=tb, l_out=L_out, inv_n=inv_n),
        out_shape=(jax.ShapeDtypeStruct((B_pad, C_out, L_out), jnp.float32),
                   jax.ShapeDtypeStruct((C_out, 1), jnp.float32),
                   jax.ShapeDtypeStruct((C_out, 1), jnp.float32)),
        grid_spec=pltpu.PrefetchScalarGridSpec(
            num_scalar_prefetch=0,
            grid=(n_steps,),
            in_specs=in_specs,
            out_specs=(
                pl.BlockSpec((tb, C_out, L_out), lambda g: (g, 0, 0)),
                pl.BlockSpec((C_out, 1), lambda g: (0, 0)),
                pl.BlockSpec((C_out, 1), lambda g: (0, 0)),
            ),
            scratch_shapes=scratch,
        ),
        compiler_params=cparams,
        cost_estimate=cost,
    )(w3, x_k, g_col, be_col)
    out = jnp.maximum(y * scale[None, :, :] + shift[None, :, :], 0.0)
    return out if B_pad == B else out[:B]


def reference(x, w, b, gamma, beta, *, stride=1, padding=0, dilation=1):
    dn = jax.lax.conv_dimension_numbers(x.shape, w.shape, ("NCH", "OIH", "NCH"))
    y = jax.lax.conv_general_dilated(
        x, w, window_strides=(stride,), padding=[(padding, padding)],
        rhs_dilation=(dilation,), dimension_numbers=dn)
    y = y + b[None, :, None]
    mean = jnp.mean(y, axis=(0, 2), keepdims=True)
    var = jnp.mean((y - mean) ** 2, axis=(0, 2), keepdims=True)  # biased (PyTorch BN fwd)
    y = (y - mean) / jnp.sqrt(var + EPS) * gamma[None, :, None] + beta[None, :, None]
    return jnp.maximum(y, 0.0)


if __name__ == "__main__":
    # Module config: ConvBNReLU(in_channels=4, out_channels=8, kernel_size=3,
    #                           stride=1, padding=1, dilation=1, groups=1, bias=True)
    B, C_in, L = 2, 4, 16
    C_out, K = 8, 3
    stride, padding, dilation = 1, 1, 1

    key = jax.random.PRNGKey(0)
    kx, kw, kb = jax.random.split(key, 3)
    x = jax.random.normal(kx, (B, C_in, L), dtype=jnp.float32)
    w = jax.random.normal(kw, (C_out, C_in, K), dtype=jnp.float32) * 0.1
    b = jax.random.normal(kb, (C_out,), dtype=jnp.float32) * 0.1
    gamma = jnp.ones((C_out,), dtype=jnp.float32)   # nn.BatchNorm1d default weight
    beta = jnp.zeros((C_out,), dtype=jnp.float32)   # nn.BatchNorm1d default bias

    out = conv_bn_relu(x, w, b, gamma, beta,
                       stride=stride, padding=padding, dilation=dilation)
    out = jax.block_until_ready(out)

    ref = reference(x, w, b, gamma, beta,
                    stride=stride, padding=padding, dilation=dilation)
    L_out = (L + 2 * padding - dilation * (K - 1) - 1) // stride + 1
    assert out.shape == ref.shape == (B, C_out, L_out)
    assert jnp.allclose(out, ref, atol=1e-4, rtol=1e-4), "mismatch vs JAX reference"

    print("KERNEL_OK")
</pallas_src>

<mosaic_0001>
module attributes {stable_mosaic.version = 11 : i64} {
  func.func @_fused_kernel(%arg0: i32, %arg1: memref<3x8x4xf32, #tpu.memory_space<vmem>>, %arg2: memref<2x4x18xf32, #tpu.memory_space<vmem>>, %arg3: memref<8x1xf32, #tpu.memory_space<vmem>>, %arg4: memref<8x1xf32, #tpu.memory_space<vmem>>, %arg5: memref<2x8x16xf32, #tpu.memory_space<vmem>>, %arg6: memref<8x16xf32, #tpu.memory_space<vmem>>, %arg7: memref<8x16xf32, #tpu.memory_space<vmem>>) attributes {dimension_semantics = [#tpu.dimension_semantics<arbitrary>], iteration_bounds = array<i64: 1>, scalar_prefetch = 0 : i64, scratch_operands = 2 : i64, tpu.core_type = #tpu.core_type<tc>, window_params = [{pipeline_mode = #tpu.pipeline_mode<synchronous>, transform_indices = @transform_0, window_bounds = array<i64: 3, 8, 4>}, {transform_indices = @transform_1, window_bounds = array<i64: 2, 4, 18>}, {pipeline_mode = #tpu.pipeline_mode<synchronous>, transform_indices = @transform_2, window_bounds = array<i64: 8, 1>}, {pipeline_mode = #tpu.pipeline_mode<synchronous>, transform_indices = @transform_3, window_bounds = array<i64: 8, 1>}, {pipeline_mode = #tpu.pipeline_mode<synchronous>, transform_indices = @transform_4, window_bounds = array<i64: 2, 8, 16>}]} {
    %c0_i32 = arith.constant 0 : i32
    %0 = arith.cmpi eq, %arg0, %c0_i32 : i32
    %1 = arith.extui %0 : i1 to i32
    %c0_i32_0 = arith.constant 0 : i32
    %2 = arith.cmpi ne, %1, %c0_i32_0 : i32
    scf.if %2 {
      %cst_51 = arith.constant 0.000000e+00 : f32
      %64 = vector.broadcast %cst_51 : f32 to vector<8x16xf32>
      %c0_52 = arith.constant 0 : index
      %c0_53 = arith.constant 0 : index
      %65 = vector.load %arg6[%c0_52, %c0_53] : memref<8x16xf32, #tpu.memory_space<vmem>>, vector<8x16xf32>
      tpu.vector_store %arg6[%c0_52, %c0_53], %64 {strides = array<i32>} : memref<8x16xf32, #tpu.memory_space<vmem>>, vector<8x16xf32>,
      %cst_54 = arith.constant 0.000000e+00 : f32
      %66 = vector.broadcast %cst_54 : f32 to vector<8x16xf32>
      %c0_55 = arith.constant 0 : index
      %c0_56 = arith.constant 0 : index
      %67 = vector.load %arg7[%c0_55, %c0_56] : memref<8x16xf32, #tpu.memory_space<vmem>>, vector<8x16xf32>
      tpu.vector_store %arg7[%c0_55, %c0_56], %66 {strides = array<i32>} : memref<8x16xf32, #tpu.memory_space<vmem>>, vector<8x16xf32>,
    } else {
    }
    %c0 = arith.constant 0 : index
    %c0_1 = arith.constant 0 : index
    %c0_2 = arith.constant 0 : index
    %3 = vector.load %arg2[%c0, %c0_1, %c0_2] : memref<2x4x18xf32, #tpu.memory_space<vmem>>, vector<1x4x18xf32>
    %4 = vector.shape_cast %3 : vector<1x4x18xf32> to vector<4x18xf32>
    %c0_3 = arith.constant 0 : index
    %c0_4 = arith.constant 0 : index
    %c0_5 = arith.constant 0 : index
    %5 = vector.load %arg1[%c0_3, %c0_4, %c0_5] : memref<3x8x4xf32, #tpu.memory_space<vmem>>, vector<1x8x4xf32>
    %6 = vector.shape_cast %5 : vector<1x8x4xf32> to vector<8x4xf32>
    %7 = vector.extract_strided_slice %4 {offsets = [0, 0], sizes = [4, 16], strides = [1, 1]} : vector<4x18xf32> to vector<4x16xf32>
    %cst = arith.constant dense<0.000000e+00> : vector<8x16xf32>
    %8 = tpu.matmul %6, %7, %cst {dimension_numbers = #tpu.dot_dimension_numbers<[1], [0], [0], [1], [0, 0, 1, 1], [], []>} : vector<8x4xf32>, vector<4x16xf32>, vector<8x16xf32> -> vector<8x16xf32>
    %c1 = arith.constant 1 : index
    %c0_6 = arith.constant 0 : index
    %c0_7 = arith.constant 0 : index
    %9 = vector.load %arg1[%c1, %c0_6, %c0_7] : memref<3x8x4xf32, #tpu.memory_space<vmem>>, vector<1x8x4xf32>
    %10 = vector.shape_cast %9 : vector<1x8x4xf32> to vector<8x4xf32>
    %11 = vector.extract_strided_slice %4 {offsets = [0, 1], sizes = [4, 16], strides = [1, 1]} : vector<4x18xf32> to vector<4x16xf32>
    %cst_8 = arith.constant dense<0.000000e+00> : vector<8x16xf32>
    %12 = tpu.matmul %10, %11, %cst_8 {dimension_numbers = #tpu.dot_dimension_numbers<[1], [0], [0], [1], [0, 0, 1, 1], [], []>} : vector<8x4xf32>, vector<4x16xf32>, vector<8x16xf32> -> vector<8x16xf32>
    %13 = arith.addf %8, %12 : vector<8x16xf32>
    %c2 = arith.constant 2 : index
    %c0_9 = arith.constant 0 : index
    %c0_10 = arith.constant 0 : index
    %14 = vector.load %arg1[%c2, %c0_9, %c0_10] : memref<3x8x4xf32, #tpu.memory_space<vmem>>, vector<1x8x4xf32>
    %15 = vector.shape_cast %14 : vector<1x8x4xf32> to vector<8x4xf32>
    %16 = vector.extract_strided_slice %4 {offsets = [0, 2], sizes = [4, 16], strides = [1, 1]} : vector<4x18xf32> to vector<4x16xf32>
    %cst_11 = arith.constant dense<0.000000e+00> : vector<8x16xf32>
    %17 = tpu.matmul %15, %16, %cst_11 {dimension_numbers = #tpu.dot_dimension_numbers<[1], [0], [0], [1], [0, 0, 1, 1], [], []>} : vector<8x4xf32>, vector<4x16xf32>, vector<8x16xf32> -> vector<8x16xf32>
    %18 = arith.addf %13, %17 : vector<8x16xf32>
    %c2_i32 = arith.constant 2 : i32
    %19 = arith.muli %arg0, %c2_i32 : i32
    %c0_i32_12 = arith.constant 0 : i32
    %20 = arith.addi %19, %c0_i32_12 : i32
    %21 = arith.index_cast %20 : i32 to index
    %c0_13 = arith.constant 0 : index
    %c0_14 = arith.constant 0 : index
    %22 = vector.load %arg5[%21, %c0_13, %c0_14] : memref<2x8x16xf32, #tpu.memory_space<vmem>>, vector<1x8x16xf32>
    %23 = vector.shape_cast %22 : vector<1x8x16xf32> to vector<8x16xf32>
    %24 = vector.shape_cast %18 : vector<8x16xf32> to vector<1x8x16xf32>
    tpu.vector_store %arg5[%21, %c0_13, %c0_14], %24 {strides = array<i32>} : memref<2x8x16xf32, #tpu.memory_space<vmem>>, vector<1x8x16xf32>,
    %c0_15 = arith.constant 0 : index
    %c0_16 = arith.constant 0 : index
    %25 = vector.load %arg6[%c0_15, %c0_16] : memref<8x16xf32, #tpu.memory_space<vmem>>, vector<8x16xf32>
    %26 = arith.addf %25, %18 : vector<8x16xf32>
    %c0_17 = arith.constant 0 : index
    %c0_18 = arith.constant 0 : index
    %27 = vector.load %arg6[%c0_17, %c0_18] : memref<8x16xf32, #tpu.memory_space<vmem>>, vector<8x16xf32>
    tpu.vector_store %arg6[%c0_17, %c0_18], %26 {strides = array<i32>} : memref<8x16xf32, #tpu.memory_space<vmem>>, vector<8x16xf32>,
    %c0_19 = arith.constant 0 : index
    %c0_20 = arith.constant 0 : index
    %28 = vector.load %arg7[%c0_19, %c0_20] : memref<8x16xf32, #tpu.memory_space<vmem>>, vector<8x16xf32>
    %29 = arith.mulf %18, %18 : vector<8x16xf32>
    %30 = arith.addf %28, %29 : vector<8x16xf32>
    %c0_21 = arith.constant 0 : index
    %c0_22 = arith.constant 0 : index
    %31 = vector.load %arg7[%c0_21, %c0_22] : memref<8x16xf32, #tpu.memory_space<vmem>>, vector<8x16xf32>
    tpu.vector_store %arg7[%c0_21, %c0_22], %30 {strides = array<i32>} : memref<8x16xf32, #tpu.memory_space<vmem>>, vector<8x16xf32>,
    %c1_23 = arith.constant 1 : index
    %c0_24 = arith.constant 0 : index
    %c0_25 = arith.constant 0 : index
    %32 = vector.load %arg2[%c1_23, %c0_24, %c0_25] : memref<2x4x18xf32, #tpu.memory_space<vmem>>, vector<1x4x18xf32>
    %33 = vector.shape_cast %32 : vector<1x4x18xf32> to vector<4x18xf32>
    %c0_26 = arith.constant 0 : index
    %c0_27 = arith.constant 0 : index
    %c0_28 = arith.constant 0 : index
    %34 = vector.load %arg1[%c0_26, %c0_27, %c0_28] : memref<3x8x4xf32, #tpu.memory_space<vmem>>, vector<1x8x4xf32>
    %35 = vector.shape_cast %34 : vector<1x8x4xf32> to vector<8x4xf32>
    %36 = vector.extract_strided_slice %33 {offsets = [0, 0], sizes = [4, 16], strides = [1, 1]} : vector<4x18xf32> to vector<4x16xf32>
    %cst_29 = arith.constant dense<0.000000e+00> : vector<8x16xf32>
    %37 = tpu.matmul %35, %36, %cst_29 {dimension_numbers = #tpu.dot_dimension_numbers<[1], [0], [0], [1], [0, 0, 1, 1], [], []>} : vector<8x4xf32>, vector<4x16xf32>, vector<8x16xf32> -> vector<8x16xf32>
    %c1_30 = arith.constant 1 : index
    %c0_31 = arith.constant 0 : index
    %c0_32 = arith.constant 0 : index
    %38 = vector.load %arg1[%c1_30, %c0_31, %c0_32] : memref<3x8x4xf32, #tpu.memory_space<vmem>>, vector<1x8x4xf32>
    %39 = vector.shape_cast %38 : vector<1x8x4xf32> to vector<8x4xf32>
    %40 = vector.extract_strided_slice %33 {offsets = [0, 1], sizes = [4, 16], strides = [1, 1]} : vector<4x18xf32> to vector<4x16xf32>
    %cst_33 = arith.constant dense<0.000000e+00> : vector<8x16xf32>
    %41 = tpu.matmul %39, %40, %cst_33 {dimension_numbers = #tpu.dot_dimension_numbers<[1], [0], [0], [1], [0, 0, 1, 1], [], []>} : vector<8x4xf32>, vector<4x16xf32>, vector<8x16xf32> -> vector<8x16xf32>
    %42 = arith.addf %37, %41 : vector<8x16xf32>
    %c2_34 = arith.constant 2 : index
    %c0_35 = arith.constant 0 : index
    %c0_36 = arith.constant 0 : index
    %43 = vector.load %arg1[%c2_34, %c0_35, %c0_36] : memref<3x8x4xf32, #tpu.memory_space<vmem>>, vector<1x8x4xf32>
    %44 = vector.shape_cast %43 : vector<1x8x4xf32> to vector<8x4xf32>
    %45 = vector.extract_strided_slice %33 {offsets = [0, 2], sizes = [4, 16], strides = [1, 1]} : vector<4x18xf32> to vector<4x16xf32>
    %cst_37 = arith.constant dense<0.000000e+00> : vector<8x16xf32>
    %46 = tpu.matmul %44, %45, %cst_37 {dimension_numbers = #tpu.dot_dimension_numbers<[1], [0], [0], [1], [0, 0, 1, 1], [], []>} : vector<8x4xf32>, vector<4x16xf32>, vector<8x16xf32> -> vector<8x16xf32>
    %47 = arith.addf %42, %46 : vector<8x16xf32>
    %c2_i32_38 = arith.constant 2 : i32
    %48 = arith.muli %arg0, %c2_i32_38 : i32
    %c1_i32 = arith.constant 1 : i32
    %49 = arith.addi %48, %c1_i32 : i32
    %50 = arith.index_cast %49 : i32 to index
    %c0_39 = arith.constant 0 : index
    %c0_40 = arith.constant 0 : index
    %51 = vector.load %arg5[%50, %c0_39, %c0_40] : memref<2x8x16xf32, #tpu.memory_space<vmem>>, vector<1x8x16xf32>
    %52 = vector.shape_cast %51 : vector<1x8x16xf32> to vector<8x16xf32>
    %53 = vector.shape_cast %47 : vector<8x16xf32> to vector<1x8x16xf32>
    tpu.vector_store %arg5[%50, %c0_39, %c0_40], %53 {strides = array<i32>} : memref<2x8x16xf32, #tpu.memory_space<vmem>>, vector<1x8x16xf32>,
    %c0_41 = arith.constant 0 : index
    %c0_42 = arith.constant 0 : index
    %54 = vector.load %arg6[%c0_41, %c0_42] : memref<8x16xf32, #tpu.memory_space<vmem>>, vector<8x16xf32>
    %55 = arith.addf %54, %47 : vector<8x16xf32>
    %c0_43 = arith.constant 0 : index
    %c0_44 = arith.constant 0 : index
    %56 = vector.load %arg6[%c0_43, %c0_44] : memref<8x16xf32, #tpu.memory_space<vmem>>, vector<8x16xf32>
    tpu.vector_store %arg6[%c0_43, %c0_44], %55 {strides = array<i32>} : memref<8x16xf32, #tpu.memory_space<vmem>>, vector<8x16xf32>,
    %c0_45 = arith.constant 0 : index
    %c0_46 = arith.constant 0 : index
    %57 = vector.load %arg7[%c0_45, %c0_46] : memref<8x16xf32, #tpu.memory_space<vmem>>, vector<8x16xf32>
    %58 = arith.mulf %47, %47 : vector<8x16xf32>
    %59 = arith.addf %57, %58 : vector<8x16xf32>
    %c0_47 = arith.constant 0 : index
    %c0_48 = arith.constant 0 : index
    %60 = vector.load %arg7[%c0_47, %c0_48] : memref<8x16xf32, #tpu.memory_space<vmem>>, vector<8x16xf32>
    tpu.vector_store %arg7[%c0_47, %c0_48], %59 {strides = array<i32>} : memref<8x16xf32, #tpu.memory_space<vmem>>, vector<8x16xf32>,
    %c0_i32_49 = arith.constant 0 : i32
    %61 = arith.cmpi eq, %arg0, %c0_i32_49 : i32
    %62 = arith.extui %61 : i1 to i32
    %c0_i32_50 = arith.constant 0 : i32
    %63 = arith.cmpi ne, %62, %c0_i32_50 : i32
    scf.if %63 {
      %c0_51 = arith.constant 0 : index
      %c0_52 = arith.constant 0 : index
      %64 = vector.load %arg6[%c0_51, %c0_52] : memref<8x16xf32, #tpu.memory_space<vmem>>, vector<8x16xf32>
      %cst_53 = arith.constant dense<0.000000e+00> : vector<8xf32>
      %65 = vector.multi_reduction <add>, %64, %cst_53 [1] : vector<8x16xf32> to vector<8xf32>
      %66 = vector.shape_cast %65 : vector<8xf32> to vector<8x1xf32>
      %cst_54 = arith.constant 3.125000e-02 : f32
      %67 = vector.broadcast %cst_54 : f32 to vector<8x1xf32>
      %68 = arith.mulf %66, %67 : vector<8x1xf32>
      %c0_55 = arith.constant 0 : index
      %c0_56 = arith.constant 0 : index
      %69 = vector.load %arg7[%c0_55, %c0_56] : memref<8x16xf32, #tpu.memory_space<vmem>>, vector<8x16xf32>
      %cst_57 = arith.constant dense<0.000000e+00> : vector<8xf32>
      %70 = vector.multi_reduction <add>, %69, %cst_57 [1] : vector<8x16xf32> to vector<8xf32>
      %71 = vector.shape_cast %70 : vector<8xf32> to vector<8x1xf32>
      %cst_58 = arith.constant 3.125000e-02 : f32
      %72 = vector.broadcast %cst_58 : f32 to vector<8x1xf32>
      %73 = arith.mulf %71, %72 : vector<8x1xf32>
      %74 = arith.mulf %68, %68 : vector<8x1xf32>
      %75 = arith.subf %73, %74 : vector<8x1xf32>
      %cst_59 = arith.constant 0.000000e+00 : f32
      %76 = vector.broadcast %cst_59 : f32 to vector<8x1xf32>
      %77 = arith.maximumf %75, %76 : vector<8x1xf32>
      %c0_60 = arith.constant 0 : index
      %c0_61 = arith.constant 0 : index
      %78 = vector.load %arg3[%c0_60, %c0_61] : memref<8x1xf32, #tpu.memory_space<vmem>>, vector<8x1xf32>
      %cst_62 = arith.constant 9.99999974E-6 : f32
      %79 = vector.broadcast %cst_62 : f32 to vector<8x1xf32>
      %80 = arith.addf %77, %79 : vector<8x1xf32>
      %81 = math.rsqrt %80 : vector<8x1xf32>
      %82 = arith.mulf %78, %81 : vector<8x1xf32>
      %c0_63 = arith.constant 0 : index
      %c0_64 = arith.constant 0 : index
      %83 = vector.load %arg4[%c0_63, %c0_64] : memref<8x1xf32, #tpu.memory_space<vmem>>, vector<8x1xf32>
      %84 = arith.mulf %68, %82 : vector<8x1xf32>
      %85 = arith.subf %83, %84 : vector<8x1xf32>
      %c0_65 = arith.constant 0 : index
      %c0_66 = arith.constant 0 : index
      %c0_67 = arith.constant 0 : index
      %86 = vector.load %arg5[%c0_65, %c0_66, %c0_67] : memref<2x8x16xf32, #tpu.memory_space<vmem>>, vector<2x8x16xf32>
      %87 = vector.shape_cast %82 : vector<8x1xf32> to vector<1x8x1xf32>
      %88 = vector.broadcast %87 : vector<1x8x1xf32> to vector<2x8x16xf32>
      %89 = arith.mulf %86, %88 : vector<2x8x16xf32>
      %90 = vector.shape_cast %85 : vector<8x1xf32> to vector<1x8x1xf32>
      %91 = vector.broadcast %90 : vector<1x8x1xf32> to vector<2x8x16xf32>
      %92 = arith.addf %89, %91 : vector<2x8x16xf32>
      %cst_68 = arith.constant 0.000000e+00 : f32
      %93 = vector.broadcast %cst_68 : f32 to vector<2x8x16xf32>
      %94 = arith.maximumf %92, %93 : vector<2x8x16xf32>
      %c0_69 = arith.constant 0 : index
      %c0_70 = arith.constant 0 : index
      %c0_71 = arith.constant 0 : index
      %95 = vector.load %arg5[%c0_69, %c0_70, %c0_71] : memref<2x8x16xf32, #tpu.memory_space<vmem>>, vector<2x8x16xf32>
      tpu.vector_store %arg5[%c0_69, %c0_70, %c0_71], %94 {strides = array<i32>} : memref<2x8x16xf32, #tpu.memory_space<vmem>>, vector<2x8x16xf32>,
    } else {
    }
    return
  }
  func.func @transform_0(%arg0: i32) -> (i32, i32, i32) {
    %c0_i32 = arith.constant 0 : i32
    %c0_i32_0 = arith.constant 0 : i32
    %c0_i32_1 = arith.constant 0 : i32
    %c0_i32_2 = arith.constant 0 : i32
    return %c0_i32, %c0_i32_0, %c0_i32_1 : i32, i32, i32
  }
  func.func @transform_1(%arg0: i32) -> (i32, i32, i32) {
    %c0_i32 = arith.constant 0 : i32
    %c0_i32_0 = arith.constant 0 : i32
    %c0_i32_1 = arith.constant 0 : i32
    return %arg0, %c0_i32, %c0_i32_0 : i32, i32, i32
  }
  func.func @transform_2(%arg0: i32) -> (i32, i32) {
    %c0_i32 = arith.constant 0 : i32
    %c0_i32_0 = arith.constant 0 : i32
    %c0_i32_1 = arith.constant 0 : i32
    return %c0_i32, %c0_i32_0 : i32, i32
  }
  func.func @transform_3(%arg0: i32) -> (i32, i32) {
    %c0_i32 = arith.constant 0 : i32
    %c0_i32_0 = arith.constant 0 : i32
    %c0_i32_1 = arith.constant 0 : i32
    return %c0_i32, %c0_i32_0 : i32, i32
  }
  func.func @transform_4(%arg0: i32) -> (i32, i32, i32) {
    %c0_i32 = arith.constant 0 : i32
    %c0_i32_0 = arith.constant 0 : i32
    %c0_i32_1 = arith.constant 0 : i32
    %c0_i32_2 = arith.constant 0 : i32
    return %c0_i32, %c0_i32_0, %c0_i32_1 : i32, i32, i32
  }
}

</mosaic_0001>

<bundles_post_ra>
// kernel: conv_bn_relu.1
= control target key start
LH: loop header
LB: loop body
LE: loop exit
PB: predicated region body
PF: predicated region fallthrough
CT: control target
= control target key end

     0   :  { %s348_s19 = smov 126   ;;  %s349_s20 = smov 127   ;;  %s428_s0 = inlined_call_operand.vmem [shape: f32[3,8,4], index: 0, kind: input, shape index: {}]   ;;  %s429_s1 = inlined_call_operand.vmem [shape: f32[2,4,18], index: 1, kind: input, shape index: {}]   ;;  %s430_s2 = inlined_call_operand.vmem [shape: f32[8,1], index: 2, kind: input, shape index: {}]   ;;  %s431_s3 = inlined_call_operand.vmem [shape: f32[8,1], index: 3, kind: input, shape index: {}]   ;;  %s432_s4 = inlined_call_operand.hbm [shape: f32[2,8,16], index: 4, kind: output, shape index: {}]  }
   0x1   :  { %v25_v0 = vld [vmem:[%s429_s1] sm:$0xf]  ;;  %v302_v1 = vld [vmem:[%s429_s1 + $0x4] sm:$0xf] }
   0x2   :  { %86 = vrot.lane.b32.xlu0 %v25_v0, %s348_s19  ;;  %131 = vrot.lane.b32.xlu1 %v302_v1, %s349_s20 }
   0x3   :  { %9 = vsyncpa [#allocation5], 0  ;;  %vm36_vm0 = vcmask 1043456   ;;  %vm32_vm1 = vcmask 31744   ;;  %v26_v2 = vld [vmem:[%s428_s0] sm:$0xff]  ;;  %v299_v3 = vld [vmem:[%s428_s0 + $0x10] sm:$0xff] }
   0x4   :  { %297 = vmatpush.msk.msra.mxu1 %vm36_vm0, %v25_v0  ;;  %v294_v6 = vld [vmem:[%s428_s0 + $0x8] sm:$0xff]  ;;  %vm22_vm2 = vcmask 130048   ;;  %v350_v9 = vmov 0.0   ;;  %v351_v34 = vmov 0   ;;  %v239_v48 = vld [vmem:[%s430_s2] sm:$0xff]  ;;  %s352_s29 = smov [#allocation4]  }
   0x5   :  { %298 = vmatmul.msk.f32.vlgmr.msra.gmra.mxu1 %vm32_vm1, %v26_v2  ;;  %23 = vst.msk [vmem:[#allocation2] sm:$0xff] %vm22_vm2, %v350_v9  ;;  %318 = vset.pattern.permute.xlu0 %v351_v34  ;;  %v252_v52 = vld [vmem:[%s431_s3] sm:$0xff]  ;;  %s279_s2 = sshll.u32 %s352_s29, 4  ;;  %s281_s6 = sshll.u32 %s432_s4, 4  ;;  %s280_s2 = int_to_ptr.vmem [resolvable:$true] %s279_s2  ;;  %s282_s6 = int_to_ptr.hbm [resolvable:$true] %s281_s6 }
   0x6   :  { %24 = vst.msk [vmem:[#allocation3] sm:$0xff] %vm22_vm2, %v350_v9  ;;  %319 = vset.pattern.permute.xlu1 %v351_v34  ;;  %s353_s3 = smov 128   ;;  %s354_s7 = smov 8  }
   0xa   :  { %30 = vrot.lane.b32.xlu0 %v25_v0, %s349_s20  ;;  %184 = vrot.lane.b32.xlu1 %v302_v1, %s348_s19 }
   0xc   :  { %v119_v14 = vld [vmem:[#allocation2] sm:$0xff] }
   0xd   :  { %v122_v16 = vld [vmem:[#allocation3] sm:$0xff] }
  0x74   :  { %v87_v4 = vpop.permute.xlu0 %86  ;;  %v132_v5 = vpop.permute.xlu1 %131 }
  0x75   :  { %300 = vmatpush.msk.msra.mxu2 %vm36_vm0, %v87_v4  ;;  %304 = vmatpush.msk.msra.mxu3 %vm36_vm0, %v132_v5 }
  0x76   :  { %301 = vmatmul.msk.f32.vlgmr.msra.gmra.mxu2 %vm32_vm1, %v299_v3  ;;  %305 = vmatmul.msk.f32.vlgmr.msra.gmra.mxu3 %vm32_vm1, %v294_v6 }
  0x7c   :  { %v31_v7 = vpop.permute.xlu0 %30  ;;  %v185_v8 = vpop.permute.xlu1 %184 }
  0x7d   :  { %295 = vmatpush.msk.msra.mxu0 %vm36_vm0, %v31_v7  ;;  %309 = vmatpush.msk.msrb.mxu1 %vm36_vm0, %v185_v8 }
  0x7e   :  { %296 = vmatmul.msk.f32.vlgmr.msra.gmra.mxu0 %vm32_vm1, %v294_v6  ;;  %310 = vmatmul.msk.f32.vlgmr.msrb.gmra.mxu1 %vm32_vm1, %v299_v3 }
  0x7f   :  { %306 = vmatpush.msk.msrb.mxu0 %vm36_vm0, %v302_v1 }
  0x82   :  { %v81_v10 = vpop.f32.mrf.mxu1 }
  0x86   :  { %307 = vmatmul.msk.f32.vlgmr.msrb.gmra.mxu0 %vm32_vm1, %v26_v2 }
  0xf9   :  { %v110_v12 = vpop.f32.mrf.mxu2  ;;  %v155_v19 = vpop.f32.mrf.mxu3 }
  0xfb   :  { %v56_v11 = vpop.f32.mrf.mxu0  ;;  %v208_v22 = vpop.f32.mrf.mxu1 }
  0xfc   :  { %v82_v13 = vadd.f32 %v81_v10, %v56_v11 }
  0xfe   :  { %v113_v15 = vadd.f32 %v110_v12, %v82_v13 }
 0x100   :  { %118 = vst.msk [vmem:[#allocation4] sm:$0xff] %vm22_vm2, %v113_v15  ;;  %v120_v17 = vadd.f32 %v119_v14, %v113_v15  ;;  %v123_v18 = vmul.f32 %v113_v15, %v113_v15 }
 0x102   :  { %121 = vst.msk [vmem:[#allocation2] sm:$0xff] %vm22_vm2, %v120_v17  ;;  %v124_v20 = vadd.f32 %v123_v18, %v122_v16 }
 0x103   :  { %v180_v21 = vpop.f32.mrf.mxu0 }
 0x104   :  { %125 = vst.msk [vmem:[#allocation3] sm:$0xff] %vm22_vm2, %v124_v20  ;;  %v181_v23 = vadd.f32 %v180_v21, %v155_v19 }
 0x106   :  { %v211_v24 = vadd.f32 %v208_v22, %v181_v23 }
 0x107   :  { %v255_v56 = vld [vmem:[#allocation4] sm:$0xff] }
 0x108   :  { %215 = vst.msk [vmem:[#allocation4 + $0x8] sm:$0xff] %vm22_vm2, %v211_v24  ;;  %v220_v25 = vmul.f32 %v211_v24, %v211_v24 }
 0x109   :  { %v216_v26 = vld [vmem:[#allocation2] sm:$0xff] }
 0x10a   :  { %v217_v27 = vadd.f32 %v216_v26, %v211_v24 }
 0x10b   :  { %v219_v28 = vld [vmem:[#allocation3] sm:$0xff] }
 0x10c   :  { %218 = vst.msk [vmem:[#allocation2] sm:$0xff] %vm22_vm2, %v217_v27  ;;  %v221_v29 = vadd.f32 %v220_v25, %v219_v28 }
 0x10e   :  { %222 = vst.msk [vmem:[#allocation3] sm:$0xff] %vm22_vm2, %v221_v29 }
 0x10f   :  { %v256_v57 = vld [vmem:[#allocation4 + $0x8] sm:$0xff] }
 0x113   :  { %v226_v30 = vld [vmem:[#allocation2] sm:$0xff] }
 0x114   :  { %v227_v31 = vsel %vm22_vm2, %v226_v30, 0.0 }
 0x115   :  { %228 = vadd.xlane.f32.xlu2 %v227_v31  ;;  %v231_v32 = vld [vmem:[#allocation3] sm:$0xff] }
 0x116   :  { %v232_v33 = vsel %vm22_vm2, %v231_v32, 0.0 }
 0x11d   :  { %233 = vadd.xlane.f32.xlu2 %v232_v33 }
 0x188   :  { %v229_v35 = vpop.xlane.xlu2 %228 }
 0x189   :  { %v230_v36 = vmul.f32 0.03125, %v229_v35 }
 0x18b   :  { %v236_v38 = vmul.f32 %v230_v36, %v230_v36 }
 0x190   :  { %v234_v37 = vpop.xlane.xlu2 %233 }
 0x191   :  { %v235_v39 = vmul.f32 0.03125, %v234_v37 }
 0x193   :  { %v237_v40 = vsub.f32 %v235_v39, %v236_v38 }
 0x195   :  { %v238_v41 = vmax.f32 %v237_v40, 0.0 }
 0x197   :  { %v240_v42 = vadd.f32 1e-05, %v238_v41 }
 0x199   :  { %320 = vrsqrt.f32 %v240_v42  ;;  %vm247_vm4 = vweird.f32 %v240_v42 }
 0x19f   :  { %v321_v43 = vpop.eup %320 }
 0x1a0   :  { %v242_v44 = vmul.f32 %v321_v43, %v240_v42  ;;  %vm248_vm3 = vweird.f32 %v321_v43 }
 0x1a1   :  { %vm249_vm5 = vmor %vm247_vm4, %vm248_vm3 }
 0x1a2   :  { %v243_v45 = vmul.f32 %v321_v43, %v242_v44 }
 0x1a4   :  { %v244_v46 = vmul.f32 0.5, %v243_v45 }
 0x1a6   :  { %v245_v47 = vsub.f32 1.5, %v244_v46 }
 0x1a8   :  { %v246_v49 = vmul.f32 %v321_v43, %v245_v47 }
 0x1aa   :  { %v250_v50 = vsel %vm249_vm5, %v321_v43, %v246_v49 }
 0x1ab   :  { %v251_v51 = vmul.f32 %v250_v50, %v239_v48 }
 0x1ad   :  { %259 = vperm.xlu0 %318, %v251_v51   ;;  %v253_v53 = vmul.f32 %v251_v51, %v230_v36 }
 0x1af   :  { %v254_v54 = vsub.f32 %v252_v52, %v253_v53 }
 0x1b1   :  { %266 = vperm.xlu1 %319, %v254_v54  }
 0x21f   :  { %v260_v55 = vpop.permute.xlu0 %259 }
 0x220   :  { %v262_v58 = vmul.f32 %v260_v55, %v255_v56  ;;  %v263_v59 = vmul.f32 %v260_v55, %v256_v57 }
 0x223   :  { %v267_v60 = vpop.permute.xlu1 %266 }
 0x224   :  { %v269_v61 = vadd.f32 %v267_v60, %v262_v58  ;;  %v270_v62 = vadd.f32 %v267_v60, %v263_v59 }
 0x226   :  { %v271_v63 = vmax.f32 %v269_v61, 0.0  ;;  %v272_v0 = vmax.f32 %v270_v62, 0.0 }
 0x228   :  { %273 = vst.msk [vmem:[#allocation4] sm:$0xff] %vm22_vm2, %v271_v63 }
 0x229   :  { %274 = vst.msk [vmem:[#allocation4 + $0x8] sm:$0xff] %vm22_vm2, %v272_v0 }
 0x22a   :  { %287 = dma.vmem_to_hbm [thread:$0]  %s280_s2, 256, %s282_s6, [#allocation5], %s353_s3, %s353_s3, %s354_s7  }
 0x22b   :  { %346 = dma.done.wait [#allocation5], 256  }
 0x22c   :  { %347 = vsyncadd [#allocation5], 4294967040 }
 0x22d   :  { %292 = vsyncpa [#allocation5], 1 }

</bundles_post_ra>
